<compile_context>
chip_gen: v5e
topology: v5e:2x2
jax: 0.10.0
libtpu: 0.0.40
codegen_flags: <defaults>
</compile_context>

<pallas_src>
import functools

import jax
import jax.numpy as jnp
from jax import lax
from jax.experimental import pallas as pl
from jax.experimental.pallas import tpu as pltpu

_HIDDEN = 14
_LANES = 128
_ROW_CHUNK = 64  # rows per inner-loop chunk: (64, 128) f32 = 8 vregs per operand


def _round_up(n, m):
    return (n + m - 1) // m * m


def _mlp_kernel(params_ref, x_ref, o_ref):
    # params_ref: SMEM (43,) f32 = [w1(14) | b1(14) | w2(14) | b2(1)]
    # x_ref, o_ref: VMEM (rt, 128) f32 blocks (batch laid out row-major on sublanes/lanes)
    rt = x_ref.shape[0]
    rc = min(rt, _ROW_CHUNK)
    n_chunks = rt // rc
    rem = rt - n_chunks * rc

    # Hoist the 43 scalar SMEM loads out of the row loop.
    w1 = [params_ref[j] for j in range(_HIDDEN)]
    b1 = [params_ref[_HIDDEN + j] for j in range(_HIDDEN)]
    w2 = [params_ref[2 * _HIDDEN + j] for j in range(_HIDDEN)]
    b2 = params_ref[3 * _HIDDEN]

    def process(row_start, nrows):
        xs = x_ref[pl.ds(row_start, nrows), :]          # (nrows, 128)
        acc = jnp.zeros(xs.shape, xs.dtype)
        for j in range(_HIDDEN):                        # exactly 14 tanh per element (EUP)
            acc = acc + w2[j] * jnp.tanh(w1[j] * xs + b1[j])
        o_ref[pl.ds(row_start, nrows), :] = acc + b2

    if n_chunks == 1 and rem == 0:
        process(0, rt)
    else:
        def body(c, carry):
            process(pl.multiple_of(c * rc, rc), rc)
            return carry

        lax.fori_loop(0, n_chunks, body, 0, unroll=True)
        if rem:
            process(n_chunks * rc, rem)


@functools.partial(jax.jit, static_argnames=("max_block_rows",))
def subclass_functional_model(x, w1, b1, w2, b2, *, max_block_rows=512):
    """Forward pass of SubclassFunctionalModel: y = tanh(x @ W1^T + b1) @ W2^T + b2.

    Args (PyTorch nn.Linear layouts):
      x:  (B, 1) f32
      w1: (14, 1) f32   hidden_linear.weight
      b1: (14,)   f32   hidden_linear.bias
      w2: (1, 14) f32   output_linear.weight
      b2: (1,)    f32   output_linear.bias
    Returns: (B, 1) f32
    """
    assert max_block_rows % _ROW_CHUNK == 0 and max_block_rows >= _ROW_CHUNK
    B = x.shape[0]
    L = _LANES
    R = -(-B // L)          # rows of the (R, 128) batch slab
    Bp = R * L

    # Pack all 43 parameter scalars into one small SMEM-resident vector.
    params = jnp.concatenate([
        w1.reshape(_HIDDEN), b1.reshape(_HIDDEN),
        w2.reshape(_HIDDEN), b2.reshape(1),
    ]).astype(jnp.float32)

    # Batch slab: free reshape; pad only to the next 128-lane multiple (skipped when aligned).
    x_flat = x.reshape(B).astype(jnp.float32)
    if Bp != B:
        x_flat = jnp.pad(x_flat, (0, Bp - B))
    x2d = x_flat.reshape(R, L)

    # Row-block selection: big blocks amortize the ~0.35us/step overhead, but keep >= 2
    # parallel steps when there is enough work so both v7x TensorCores get a share.
    if R <= 8:
        block_rows = R                                   # single (full-dim) block
    elif R <= max_block_rows:
        block_rows = _round_up(-(-R // 2), 8)            # 2 steps
    else:
        block_rows = max_block_rows                      # cdiv(R, 512) >= 2 steps
    num_blocks = -(-R // block_rows)

    cost = pl.CostEstimate(
        flops=4 * _HIDDEN * Bp,            # 14 x (mul+add) for layer 1 + 14 x (mul+add) accumulate
        transcendentals=_HIDDEN * Bp,      # exactly 14 tanh per (padded) element
        bytes_accessed=4 * (2 * Bp + 3 * _HIDDEN + 1),
    )

    out2d = pl.pallas_call(
        _mlp_kernel,
        out_shape=jax.ShapeDtypeStruct((R, L), jnp.float32),
        grid=(num_blocks,),
        in_specs=[
            pl.BlockSpec(memory_space=pltpu.MemorySpace.SMEM),   # packed params (resident)
            pl.BlockSpec((block_rows, L), lambda i: (i, 0)),     # batch row block
        ],
        out_specs=pl.BlockSpec((block_rows, L), lambda i: (i, 0)),
        compiler_params=pltpu.CompilerParams(
            dimension_semantics=("parallel",)),
        cost_estimate=cost,
    )(params, x2d)

    out_flat = out2d.reshape(Bp)
    if Bp != B:
        out_flat = out_flat[:B]
    return out_flat.reshape(B, 1)


if __name__ == "__main__":
    key = jax.random.PRNGKey(0)
    k1, k2, k3, k4, kx = jax.random.split(key, 5)

    # PyTorch nn.Linear default init: U(-1/sqrt(fan_in), 1/sqrt(fan_in)).
    w1 = jax.random.uniform(k1, (14, 1), jnp.float32, -1.0, 1.0)        # fan_in = 1
    b1 = jax.random.uniform(k2, (14,), jnp.float32, -1.0, 1.0)
    bound2 = float(1.0 / jnp.sqrt(14.0))
    w2 = jax.random.uniform(k3, (1, 14), jnp.float32, -bound2, bound2)  # fan_in = 14
    b2 = jax.random.uniform(k4, (1,), jnp.float32, -bound2, bound2)

    def ref_forward(xv):
        # Pure elementwise f32 reference (no matmul-precision ambiguity).
        h = jnp.tanh(xv * w1.reshape(1, _HIDDEN) + b1.reshape(1, _HIDDEN))
        return jnp.sum(h * w2.reshape(1, _HIDDEN), axis=1, keepdims=True) + b2

    # Small batch: single (1, 128) block.
    B = 8
    x = jax.random.normal(kx, (B, 1), jnp.float32)
    out = jax.block_until_ready(subclass_functional_model(x, w1, b1, w2, b2))
    assert out.shape == (B, 1)
    assert jnp.allclose(out, ref_forward(x), atol=1e-5, rtol=1e-5), "mismatch (B=8)"

    # Non-128-aligned batch: exercises the lane padding path (R=3 rows, one block).
    B2 = 300
    x2 = jax.random.normal(kx, (B2, 1), jnp.float32)
    out2 = jax.block_until_ready(subclass_functional_model(x2, w1, b1, w2, b2))
    assert out2.shape == (B2, 1)
    assert jnp.allclose(out2, ref_forward(x2), atol=1e-5, rtol=1e-5), "mismatch (B=300)"

    # Larger batch: exercises the 2-step parallel grid, the inner chunk loop, the static
    # remainder chunk, and the ragged (masked) last row block.
    B3 = 20000
    x3 = jax.random.normal(kx, (B3, 1), jnp.float32)
    out3 = jax.block_until_ready(subclass_functional_model(x3, w1, b1, w2, b2))
    assert out3.shape == (B3, 1)
    assert jnp.allclose(out3, ref_forward(x3), atol=1e-5, rtol=1e-5), "mismatch (B=20000)"

    print("KERNEL_OK")
</pallas_src>

<mosaic_0001>
module attributes {stable_mosaic.version = 11 : i64} {
  func.func @_mlp_kernel(%arg0: i32, %arg1: memref<43xf32, #tpu.memory_space<smem>>, %arg2: memref<1x128xf32, #tpu.memory_space<vmem>>, %arg3: memref<1x128xf32, #tpu.memory_space<vmem>>) attributes {dimension_semantics = [#tpu.dimension_semantics<parallel>], iteration_bounds = array<i64: 1>, scalar_prefetch = 0 : i64, scratch_operands = 0 : i64, tpu.core_type = #tpu.core_type<tc>, window_params = [{transform_indices = @transform_0, window_bounds = array<i64: 43>}, {transform_indices = @transform_1, window_bounds = array<i64: 1, 128>}, {transform_indices = @transform_2, window_bounds = array<i64: 1, 128>}]} {
    %c0 = arith.constant 0 : index
    %0 = memref.load %arg1[%c0] : memref<43xf32, #tpu.memory_space<smem>>
    %c1 = arith.constant 1 : index
    %1 = memref.load %arg1[%c1] : memref<43xf32, #tpu.memory_space<smem>>
    %c2 = arith.constant 2 : index
    %2 = memref.load %arg1[%c2] : memref<43xf32, #tpu.memory_space<smem>>
    %c3 = arith.constant 3 : index
    %3 = memref.load %arg1[%c3] : memref<43xf32, #tpu.memory_space<smem>>
    %c4 = arith.constant 4 : index
    %4 = memref.load %arg1[%c4] : memref<43xf32, #tpu.memory_space<smem>>
    %c5 = arith.constant 5 : index
    %5 = memref.load %arg1[%c5] : memref<43xf32, #tpu.memory_space<smem>>
    %c6 = arith.constant 6 : index
    %6 = memref.load %arg1[%c6] : memref<43xf32, #tpu.memory_space<smem>>
    %c7 = arith.constant 7 : index
    %7 = memref.load %arg1[%c7] : memref<43xf32, #tpu.memory_space<smem>>
    %c8 = arith.constant 8 : index
    %8 = memref.load %arg1[%c8] : memref<43xf32, #tpu.memory_space<smem>>
    %c9 = arith.constant 9 : index
    %9 = memref.load %arg1[%c9] : memref<43xf32, #tpu.memory_space<smem>>
    %c10 = arith.constant 10 : index
    %10 = memref.load %arg1[%c10] : memref<43xf32, #tpu.memory_space<smem>>
    %c11 = arith.constant 11 : index
    %11 = memref.load %arg1[%c11] : memref<43xf32, #tpu.memory_space<smem>>
    %c12 = arith.constant 12 : index
    %12 = memref.load %arg1[%c12] : memref<43xf32, #tpu.memory_space<smem>>
    %c13 = arith.constant 13 : index
    %13 = memref.load %arg1[%c13] : memref<43xf32, #tpu.memory_space<smem>>
    %c14 = arith.constant 14 : index
    %14 = memref.load %arg1[%c14] : memref<43xf32, #tpu.memory_space<smem>>
    %c15 = arith.constant 15 : index
    %15 = memref.load %arg1[%c15] : memref<43xf32, #tpu.memory_space<smem>>
    %c16 = arith.constant 16 : index
    %16 = memref.load %arg1[%c16] : memref<43xf32, #tpu.memory_space<smem>>
    %c17 = arith.constant 17 : index
    %17 = memref.load %arg1[%c17] : memref<43xf32, #tpu.memory_space<smem>>
    %c18 = arith.constant 18 : index
    %18 = memref.load %arg1[%c18] : memref<43xf32, #tpu.memory_space<smem>>
    %c19 = arith.constant 19 : index
    %19 = memref.load %arg1[%c19] : memref<43xf32, #tpu.memory_space<smem>>
    %c20 = arith.constant 20 : index
    %20 = memref.load %arg1[%c20] : memref<43xf32, #tpu.memory_space<smem>>
    %c21 = arith.constant 21 : index
    %21 = memref.load %arg1[%c21] : memref<43xf32, #tpu.memory_space<smem>>
    %c22 = arith.constant 22 : index
    %22 = memref.load %arg1[%c22] : memref<43xf32, #tpu.memory_space<smem>>
    %c23 = arith.constant 23 : index
    %23 = memref.load %arg1[%c23] : memref<43xf32, #tpu.memory_space<smem>>
    %c24 = arith.constant 24 : index
    %24 = memref.load %arg1[%c24] : memref<43xf32, #tpu.memory_space<smem>>
    %c25 = arith.constant 25 : index
    %25 = memref.load %arg1[%c25] : memref<43xf32, #tpu.memory_space<smem>>
    %c26 = arith.constant 26 : index
    %26 = memref.load %arg1[%c26] : memref<43xf32, #tpu.memory_space<smem>>
    %c27 = arith.constant 27 : index
    %27 = memref.load %arg1[%c27] : memref<43xf32, #tpu.memory_space<smem>>
    %c28 = arith.constant 28 : index
    %28 = memref.load %arg1[%c28] : memref<43xf32, #tpu.memory_space<smem>>
    %c29 = arith.constant 29 : index
    %29 = memref.load %arg1[%c29] : memref<43xf32, #tpu.memory_space<smem>>
    %c30 = arith.constant 30 : index
    %30 = memref.load %arg1[%c30] : memref<43xf32, #tpu.memory_space<smem>>
    %c31 = arith.constant 31 : index
    %31 = memref.load %arg1[%c31] : memref<43xf32, #tpu.memory_space<smem>>
    %c32 = arith.constant 32 : index
    %32 = memref.load %arg1[%c32] : memref<43xf32, #tpu.memory_space<smem>>
    %c33 = arith.constant 33 : index
    %33 = memref.load %arg1[%c33] : memref<43xf32, #tpu.memory_space<smem>>
    %c34 = arith.constant 34 : index
    %34 = memref.load %arg1[%c34] : memref<43xf32, #tpu.memory_space<smem>>
    %c35 = arith.constant 35 : index
    %35 = memref.load %arg1[%c35] : memref<43xf32, #tpu.memory_space<smem>>
    %c36 = arith.constant 36 : index
    %36 = memref.load %arg1[%c36] : memref<43xf32, #tpu.memory_space<smem>>
    %c37 = arith.constant 37 : index
    %37 = memref.load %arg1[%c37] : memref<43xf32, #tpu.memory_space<smem>>
    %c38 = arith.constant 38 : index
    %38 = memref.load %arg1[%c38] : memref<43xf32, #tpu.memory_space<smem>>
    %c39 = arith.constant 39 : index
    %39 = memref.load %arg1[%c39] : memref<43xf32, #tpu.memory_space<smem>>
    %c40 = arith.constant 40 : index
    %40 = memref.load %arg1[%c40] : memref<43xf32, #tpu.memory_space<smem>>
    %c41 = arith.constant 41 : index
    %41 = memref.load %arg1[%c41] : memref<43xf32, #tpu.memory_space<smem>>
    %c42 = arith.constant 42 : index
    %42 = memref.load %arg1[%c42] : memref<43xf32, #tpu.memory_space<smem>>
    %c0_0 = arith.constant 0 : index
    %c0_1 = arith.constant 0 : index
    %43 = vector.load %arg2[%c0_0, %c0_1] : memref<1x128xf32, #tpu.memory_space<vmem>>, vector<1x128xf32>
    %cst = arith.constant 0.000000e+00 : f32
    %44 = vector.broadcast %cst : f32 to vector<1x128xf32>
    %45 = vector.broadcast %0 : f32 to vector<1x128xf32>
    %46 = arith.mulf %45, %43 : vector<1x128xf32>
    %47 = vector.broadcast %14 : f32 to vector<1x128xf32>
    %48 = arith.addf %46, %47 : vector<1x128xf32>
    %49 = math.tanh %48 : vector<1x128xf32>
    %50 = vector.broadcast %28 : f32 to vector<1x128xf32>
    %51 = arith.mulf %50, %49 : vector<1x128xf32>
    %52 = arith.addf %44, %51 : vector<1x128xf32>
    %53 = vector.broadcast %1 : f32 to vector<1x128xf32>
    %54 = arith.mulf %53, %43 : vector<1x128xf32>
    %55 = vector.broadcast %15 : f32 to vector<1x128xf32>
    %56 = arith.addf %54, %55 : vector<1x128xf32>
    %57 = math.tanh %56 : vector<1x128xf32>
    %58 = vector.broadcast %29 : f32 to vector<1x128xf32>
    %59 = arith.mulf %58, %57 : vector<1x128xf32>
    %60 = arith.addf %52, %59 : vector<1x128xf32>
    %61 = vector.broadcast %2 : f32 to vector<1x128xf32>
    %62 = arith.mulf %61, %43 : vector<1x128xf32>
    %63 = vector.broadcast %16 : f32 to vector<1x128xf32>
    %64 = arith.addf %62, %63 : vector<1x128xf32>
    %65 = math.tanh %64 : vector<1x128xf32>
    %66 = vector.broadcast %30 : f32 to vector<1x128xf32>
    %67 = arith.mulf %66, %65 : vector<1x128xf32>
    %68 = arith.addf %60, %67 : vector<1x128xf32>
    %69 = vector.broadcast %3 : f32 to vector<1x128xf32>
    %70 = arith.mulf %69, %43 : vector<1x128xf32>
    %71 = vector.broadcast %17 : f32 to vector<1x128xf32>
    %72 = arith.addf %70, %71 : vector<1x128xf32>
    %73 = math.tanh %72 : vector<1x128xf32>
    %74 = vector.broadcast %31 : f32 to vector<1x128xf32>
    %75 = arith.mulf %74, %73 : vector<1x128xf32>
    %76 = arith.addf %68, %75 : vector<1x128xf32>
    %77 = vector.broadcast %4 : f32 to vector<1x128xf32>
    %78 = arith.mulf %77, %43 : vector<1x128xf32>
    %79 = vector.broadcast %18 : f32 to vector<1x128xf32>
    %80 = arith.addf %78, %79 : vector<1x128xf32>
    %81 = math.tanh %80 : vector<1x128xf32>
    %82 = vector.broadcast %32 : f32 to vector<1x128xf32>
    %83 = arith.mulf %82, %81 : vector<1x128xf32>
    %84 = arith.addf %76, %83 : vector<1x128xf32>
    %85 = vector.broadcast %5 : f32 to vector<1x128xf32>
    %86 = arith.mulf %85, %43 : vector<1x128xf32>
    %87 = vector.broadcast %19 : f32 to vector<1x128xf32>
    %88 = arith.addf %86, %87 : vector<1x128xf32>
    %89 = math.tanh %88 : vector<1x128xf32>
    %90 = vector.broadcast %33 : f32 to vector<1x128xf32>
    %91 = arith.mulf %90, %89 : vector<1x128xf32>
    %92 = arith.addf %84, %91 : vector<1x128xf32>
    %93 = vector.broadcast %6 : f32 to vector<1x128xf32>
    %94 = arith.mulf %93, %43 : vector<1x128xf32>
    %95 = vector.broadcast %20 : f32 to vector<1x128xf32>
    %96 = arith.addf %94, %95 : vector<1x128xf32>
    %97 = math.tanh %96 : vector<1x128xf32>
    %98 = vector.broadcast %34 : f32 to vector<1x128xf32>
    %99 = arith.mulf %98, %97 : vector<1x128xf32>
    %100 = arith.addf %92, %99 : vector<1x128xf32>
    %101 = vector.broadcast %7 : f32 to vector<1x128xf32>
    %102 = arith.mulf %101, %43 : vector<1x128xf32>
    %103 = vector.broadcast %21 : f32 to vector<1x128xf32>
    %104 = arith.addf %102, %103 : vector<1x128xf32>
    %105 = math.tanh %104 : vector<1x128xf32>
    %106 = vector.broadcast %35 : f32 to vector<1x128xf32>
    %107 = arith.mulf %106, %105 : vector<1x128xf32>
    %108 = arith.addf %100, %107 : vector<1x128xf32>
    %109 = vector.broadcast %8 : f32 to vector<1x128xf32>
    %110 = arith.mulf %109, %43 : vector<1x128xf32>
    %111 = vector.broadcast %22 : f32 to vector<1x128xf32>
    %112 = arith.addf %110, %111 : vector<1x128xf32>
    %113 = math.tanh %112 : vector<1x128xf32>
    %114 = vector.broadcast %36 : f32 to vector<1x128xf32>
    %115 = arith.mulf %114, %113 : vector<1x128xf32>
    %116 = arith.addf %108, %115 : vector<1x128xf32>
    %117 = vector.broadcast %9 : f32 to vector<1x128xf32>
    %118 = arith.mulf %117, %43 : vector<1x128xf32>
    %119 = vector.broadcast %23 : f32 to vector<1x128xf32>
    %120 = arith.addf %118, %119 : vector<1x128xf32>
    %121 = math.tanh %120 : vector<1x128xf32>
    %122 = vector.broadcast %37 : f32 to vector<1x128xf32>
    %123 = arith.mulf %122, %121 : vector<1x128xf32>
    %124 = arith.addf %116, %123 : vector<1x128xf32>
    %125 = vector.broadcast %10 : f32 to vector<1x128xf32>
    %126 = arith.mulf %125, %43 : vector<1x128xf32>
    %127 = vector.broadcast %24 : f32 to vector<1x128xf32>
    %128 = arith.addf %126, %127 : vector<1x128xf32>
    %129 = math.tanh %128 : vector<1x128xf32>
    %130 = vector.broadcast %38 : f32 to vector<1x128xf32>
    %131 = arith.mulf %130, %129 : vector<1x128xf32>
    %132 = arith.addf %124, %131 : vector<1x128xf32>
    %133 = vector.broadcast %11 : f32 to vector<1x128xf32>
    %134 = arith.mulf %133, %43 : vector<1x128xf32>
    %135 = vector.broadcast %25 : f32 to vector<1x128xf32>
    %136 = arith.addf %134, %135 : vector<1x128xf32>
    %137 = math.tanh %136 : vector<1x128xf32>
    %138 = vector.broadcast %39 : f32 to vector<1x128xf32>
    %139 = arith.mulf %138, %137 : vector<1x128xf32>
    %140 = arith.addf %132, %139 : vector<1x128xf32>
    %141 = vector.broadcast %12 : f32 to vector<1x128xf32>
    %142 = arith.mulf %141, %43 : vector<1x128xf32>
    %143 = vector.broadcast %26 : f32 to vector<1x128xf32>
    %144 = arith.addf %142, %143 : vector<1x128xf32>
    %145 = math.tanh %144 : vector<1x128xf32>
    %146 = vector.broadcast %40 : f32 to vector<1x128xf32>
    %147 = arith.mulf %146, %145 : vector<1x128xf32>
    %148 = arith.addf %140, %147 : vector<1x128xf32>
    %149 = vector.broadcast %13 : f32 to vector<1x128xf32>
    %150 = arith.mulf %149, %43 : vector<1x128xf32>
    %151 = vector.broadcast %27 : f32 to vector<1x128xf32>
    %152 = arith.addf %150, %151 : vector<1x128xf32>
    %153 = math.tanh %152 : vector<1x128xf32>
    %154 = vector.broadcast %41 : f32 to vector<1x128xf32>
    %155 = arith.mulf %154, %153 : vector<1x128xf32>
    %156 = arith.addf %148, %155 : vector<1x128xf32>
    %157 = vector.broadcast %42 : f32 to vector<1x128xf32>
    %158 = arith.addf %156, %157 : vector<1x128xf32>
    %c0_2 = arith.constant 0 : index
    %c0_3 = arith.constant 0 : index
    %159 = vector.load %arg3[%c0_2, %c0_3] : memref<1x128xf32, #tpu.memory_space<vmem>>, vector<1x128xf32>
    tpu.vector_store %arg3[%c0_2, %c0_3], %158 {strides = array<i32>} : memref<1x128xf32, #tpu.memory_space<vmem>>, vector<1x128xf32>,
    return
  }
  func.func @transform_0(%arg0: i32) -> i32 {
    %c0_i32 = arith.constant 0 : i32
    %c0_i32_0 = arith.constant 0 : i32
    return %c0_i32 : i32
  }
  func.func @transform_1(%arg0: i32) -> (i32, i32) {
    %c0_i32 = arith.constant 0 : i32
    %c0_i32_0 = arith.constant 0 : i32
    return %arg0, %c0_i32 : i32, i32
  }
  func.func @transform_2(%arg0: i32) -> (i32, i32) {
    %c0_i32 = arith.constant 0 : i32
    %c0_i32_0 = arith.constant 0 : i32
    return %arg0, %c0_i32 : i32, i32
  }
}

</mosaic_0001>

<bundles_post_ra>
// kernel: subclass_functional_model.1
= control target key start
LH: loop header
LB: loop body
LE: loop exit
PB: predicated region body
PF: predicated region fallthrough
CT: control target
= control target key end

     0   :  { %7 = vsyncpa [#allocation3], 0  ;;  %s273_s12 = smov [#allocation2]   ;;  %s413_s0 = inlined_call_operand.vmem [shape: f32[43], index: 0, kind: input, shape index: {}]   ;;  %s414_s1 = inlined_call_operand.vmem [shape: f32[1,128], index: 1, kind: input, shape index: {}]   ;;  %s415_s2 = inlined_call_operand.vmem [shape: f32[1,128], index: 2, kind: output, shape index: {}]  }
   0x1   :  { %s13_s11 = sshll.u32 %s413_s0, 4  ;;  %s14_s11 = int_to_ptr.vmem [resolvable:$true] %s13_s11 }
   0x2   :  { %16 = dma.vmem_to_smem %s14_s11, 16, %s273_s12, [#allocation3]  }
   0x3   :  { %271 = dma.done.wait [#allocation3], 16  }
   0x4   :  { %272 = vsyncadd [#allocation3], 4294967280 }
   0x5   :  { %23 = sfence }
   0x6   :  { %s24_s13 = sld [smem:[#allocation2]]  ;;  %v317_v0 = vld [vmem:[%s414_s1] sm:$0x1] }
   0x7   :  { %s188_s14 = sld [smem:[#allocation2 + $0x1]] }
   0x8   :  { %s189_s15 = sld [smem:[#allocation2 + $0x2]] }
   0x9   :  { %s292_s16 = sld [smem:[#allocation2 + $0x3]] }
   0xa   :  { %s294_s17 = sld [smem:[#allocation2 + $0x4]] }
   0xb   :  { %s296_s18 = sld [smem:[#allocation2 + $0x5]] }
   0xc   :  { %s298_s19 = sld [smem:[#allocation2 + $0x6]]  ;;  %v68_v1 = vstv %s24_s13 }
   0xd   :  { %s300_s20 = sld [smem:[#allocation2 + $0x7]]  ;;  %v76_v2 = vstv %s188_s14  ;;  %v69_v4 = vmul.f32 %v68_v1, %v317_v0 }
   0xe   :  { %s302_s0 = sld [smem:[#allocation2 + $0x8]]  ;;  %v84_v3 = vstv %s189_s15  ;;  %v77_v6 = vmul.f32 %v76_v2, %v317_v0 }
   0xf   :  { %s304_s21 = sld [smem:[#allocation2 + $0x9]]  ;;  %v92_v5 = vstv %s292_s16  ;;  %v85_v8 = vmul.f32 %v84_v3, %v317_v0 }
  0x10   :  { %s306_s22 = sld [smem:[#allocation2 + $0xa]]  ;;  %v100_v9 = vstv %s294_s17  ;;  %v93_v11 = vmul.f32 %v92_v5, %v317_v0 }
  0x11   :  { %s308_s23 = sld [smem:[#allocation2 + $0xb]]  ;;  %v108_v14 = vstv %s296_s18  ;;  %v101_v17 = vmul.f32 %v100_v9, %v317_v0 }
  0x12   :  { %s310_s24 = sld [smem:[#allocation2 + $0xc]]  ;;  %v116_v20 = vstv %s298_s19  ;;  %v109_v22 = vmul.f32 %v108_v14, %v317_v0 }
  0x13   :  { %s312_s25 = sld [smem:[#allocation2 + $0xd]]  ;;  %v124_v24 = vstv %s300_s20  ;;  %v117_v26 = vmul.f32 %v116_v20, %v317_v0 }
  0x14   :  { %s201_s26 = sld [smem:[#allocation2 + $0xe]]  ;;  %v132_v28 = vstv %s302_s0  ;;  %v125_v30 = vmul.f32 %v124_v24, %v317_v0 }
  0x15   :  { %s202_s27 = sld [smem:[#allocation2 + $0xf]]  ;;  %v140_v32 = vstv %s304_s21  ;;  %v133_v35 = vmul.f32 %v132_v28, %v317_v0 }
  0x16   :  { %s203_s30 = sld [smem:[#allocation2 + $0x10]]  ;;  %v148_v33 = vstv %s306_s22  ;;  %v141_v41 = vmul.f32 %v140_v32, %v317_v0 }
  0x17   :  { %s204_s3 = sld [smem:[#allocation2 + $0x11]]  ;;  %v156_v36 = vstv %s308_s23  ;;  %v149_v42 = vmul.f32 %v148_v33, %v317_v0 }
  0x18   :  { %s319_s4 = sld [smem:[#allocation2 + $0x12]]  ;;  %v157_v46 = vmul.f32 %v156_v36, %v317_v0  ;;  %v164_v47 = vstv %s310_s24 }
  0x19   :  { %s323_s5 = sld [smem:[#allocation2 + $0x13]]  ;;  %v172_v55 = vstv %s312_s25 }
  0x1a   :  { %s326_s6 = sld [smem:[#allocation2 + $0x14]]  ;;  %v70_v7 = vstv %s201_s26 }
  0x1b   :  { %s330_s1 = sld [smem:[#allocation2 + $0x15]]  ;;  %v78_v10 = vstv %s202_s27  ;;  %v71_v12 = vadd.f32 %v70_v7, %v69_v4  ;;  %v165_v4 = vmul.f32 %v164_v47, %v317_v0 }
  0x1c   :  { %s333_s7 = sld [smem:[#allocation2 + $0x16]]  ;;  %v86_v13 = vstv %s203_s30  ;;  %v79_v15 = vadd.f32 %v78_v10, %v77_v6 }
  0x1d   :  { %s336_s8 = sld [smem:[#allocation2 + $0x17]]  ;;  %v94_v16 = vstv %s204_s3  ;;  %v87_v18 = vadd.f32 %v86_v13, %v85_v8  ;;  %231 = vtanh.f32 %v71_v12 }
  0x1e   :  { %s339_s9 = sld [smem:[#allocation2 + $0x18]]  ;;  %v102_v19 = vstv %s319_s4  ;;  %v95_v21 = vadd.f32 %v94_v16, %v93_v11  ;;  %233 = vtanh.f32 %v79_v15  ;;  %v173_v11 = vmul.f32 %v172_v55, %v317_v0 }
  0x1f   :  { %s343_s10 = sld [smem:[#allocation2 + $0x19]]  ;;  %v110_v23 = vstv %s323_s5  ;;  %v103_v25 = vadd.f32 %v102_v19, %v101_v17  ;;  %235 = vtanh.f32 %v87_v18 }
  0x20   :  { %s346_s11 = sld [smem:[#allocation2 + $0x1a]]  ;;  %v118_v27 = vstv %s326_s6  ;;  %237 = vtanh.f32 %v95_v21  ;;  %v111_v29 = vadd.f32 %v110_v23, %v109_v22 }
  0x21   :  { %s350_s12 = sld [smem:[#allocation2 + $0x1b]]  ;;  %v126_v31 = vstv %s330_s1  ;;  %239 = vtanh.f32 %v103_v25  ;;  %v119_v34 = vadd.f32 %v118_v27, %v117_v26 }
  0x22   :  { %s353_s13 = sld [smem:[#allocation2 + $0x1c]]  ;;  %v134_v38 = vstv %s333_s7  ;;  %241 = vtanh.f32 %v111_v29  ;;  %v127_v40 = vadd.f32 %v126_v31, %v125_v30 }
  0x23   :  { %s357_s14 = sld [smem:[#allocation2 + $0x1d]]  ;;  %v232_v37 = vpop.eup %231  ;;  %v142_v45 = vstv %s336_s8  ;;  %243 = vtanh.f32 %v119_v34  ;;  %v135_v51 = vadd.f32 %v134_v38, %v133_v35 }
  0x24   :  { %s360_s15 = sld [smem:[#allocation2 + $0x1e]]  ;;  %v234_v39 = vpop.eup %233  ;;  %v150_v54 = vstv %s339_s9  ;;  %245 = vtanh.f32 %v127_v40  ;;  %v143_v59 = vadd.f32 %v142_v45, %v141_v41 }
  0x25   :  { %s365_s16 = sld [smem:[#allocation2 + $0x1f]]  ;;  %v236_v43 = vpop.eup %235  ;;  %v158_v63 = vstv %s343_s10  ;;  %247 = vtanh.f32 %v135_v51  ;;  %v151_v3 = vadd.f32 %v150_v54, %v149_v42 }
  0x26   :  { %s369_s17 = sld [smem:[#allocation2 + $0x20]]  ;;  %v238_v48 = vpop.eup %237  ;;  %v166_v7 = vstv %s346_s11  ;;  %249 = vtanh.f32 %v143_v59  ;;  %v159_v10 = vadd.f32 %v158_v63, %v157_v46 }
  0x27   :  { %s372_s18 = sld [smem:[#allocation2 + $0x21]]  ;;  %v240_v56 = vpop.eup %239  ;;  %v174_v14 = vstv %s350_s12  ;;  %251 = vtanh.f32 %v151_v3  ;;  %v167_v17 = vadd.f32 %v166_v7, %v165_v4 }
  0x28   :  { %s376_s19 = sld [smem:[#allocation2 + $0x22]]  ;;  %v73_v44 = vstv %s353_s13  ;;  %v242_v1 = vpop.eup %241  ;;  %253 = vtanh.f32 %v159_v10  ;;  %v175_v22 = vadd.f32 %v174_v14, %v173_v11 }
  0x29   :  { %s382_s20 = sld [smem:[#allocation2 + $0x23]]  ;;  %v74_v49 = vmul.f32 %v232_v37, %v73_v44  ;;  %v81_v50 = vstv %s357_s14  ;;  %v244_v8 = vpop.eup %243  ;;  %255 = vtanh.f32 %v167_v17 }
  0x2a   :  { %v82_v52 = vmul.f32 %v234_v39, %v81_v50  ;;  %v89_v53 = vstv %s360_s15  ;;  %s388_s0 = sld [smem:[#allocation2 + $0x24]]  ;;  %v246_v15 = vpop.eup %245  ;;  %257 = vtanh.f32 %v175_v22 }
  0x2b   :  { %v90_v57 = vmul.f32 %v236_v43, %v89_v53  ;;  %v97_v58 = vstv %s365_s16  ;;  %s393_s21 = sld [smem:[#allocation2 + $0x25]]  ;;  %v248_v20 = vpop.eup %247 }
  0x2c   :  { %v83_v60 = vadd.f32 %v82_v52, %v74_v49  ;;  %v98_v61 = vmul.f32 %v238_v48, %v97_v58  ;;  %v105_v62 = vstv %s369_s17  ;;  %s398_s22 = sld [smem:[#allocation2 + $0x26]]  ;;  %v250_v24 = vpop.eup %249 }
  0x2d   :  { %v113_v2 = vstv %s372_s18  ;;  %v106_v6 = vmul.f32 %v240_v56, %v105_v62  ;;  %s403_s23 = sld [smem:[#allocation2 + $0x27]]  ;;  %v252_v28 = vpop.eup %251 }
  0x2e   :  { %v91_v5 = vadd.f32 %v90_v57, %v83_v60  ;;  %v121_v9 = vstv %s376_s19  ;;  %v114_v13 = vmul.f32 %v242_v1, %v113_v2  ;;  %s227_s24 = sld [smem:[#allocation2 + $0x28]]  ;;  %v254_v32 = vpop.eup %253 }
  0x2f   :  { %v129_v16 = vstv %s382_s20  ;;  %v122_v19 = vmul.f32 %v244_v8, %v121_v9  ;;  %s228_s25 = sld [smem:[#allocation2 + $0x29]]  ;;  %v256_v36 = vpop.eup %255 }
  0x30   :  { %v99_v12 = vadd.f32 %v98_v61, %v91_v5  ;;  %v137_v21 = vstv %s388_s0  ;;  %v130_v23 = vmul.f32 %v246_v15, %v129_v16  ;;  %s229_s26 = sld [smem:[#allocation2 + $0x2a]]  ;;  %v258_v40 = vpop.eup %257 }
  0x31   :  { %v145_v25 = vstv %s393_s21  ;;  %v138_v27 = vmul.f32 %v248_v20, %v137_v21 }
  0x32   :  { %v107_v18 = vadd.f32 %v106_v6, %v99_v12  ;;  %v153_v29 = vstv %s398_s22  ;;  %v146_v31 = vmul.f32 %v250_v24, %v145_v25 }
  0x33   :  { %v161_v33 = vstv %s403_s23  ;;  %v154_v35 = vmul.f32 %v252_v28, %v153_v29 }
  0x34   :  { %v115_v0 = vadd.f32 %v114_v13, %v107_v18  ;;  %v169_v37 = vstv %s227_s24  ;;  %v162_v39 = vmul.f32 %v254_v32, %v161_v33 }
  0x35   :  { %v177_v41 = vstv %s228_s25  ;;  %v170_v43 = vmul.f32 %v256_v36, %v169_v37 }
  0x36   :  { %v123_v26 = vadd.f32 %v122_v19, %v115_v0  ;;  %v178_v45 = vmul.f32 %v258_v40, %v177_v41  ;;  %v180_v47 = vstv %s229_s26 }
  0x38   :  { %v131_v30 = vadd.f32 %v130_v23, %v123_v26 }
  0x3a   :  { %v139_v34 = vadd.f32 %v138_v27, %v131_v30 }
  0x3c   :  { %v147_v38 = vadd.f32 %v146_v31, %v139_v34 }
  0x3e   :  { %v155_v42 = vadd.f32 %v154_v35, %v147_v38 }
  0x40   :  { %v163_v44 = vadd.f32 %v162_v39, %v155_v42 }
  0x42   :  { %v171_v46 = vadd.f32 %v170_v43, %v163_v44 }
  0x44   :  { %v179_v48 = vadd.f32 %v178_v45, %v171_v46 }
  0x46   :  { %v181_v49 = vadd.f32 %v180_v47, %v179_v48 }
  0x48   :  { %182 = vst [vmem:[%s415_s2] sm:$0x1] %v181_v49 }
  0x49   :  { %187 = vsyncpa [#allocation3], 1 }

</bundles_post_ra>
